<compile_context>
chip_gen: v6e
topology: v6e:2x2x1
jax: 0.10.0
libtpu: 0.0.40
codegen_flags: <defaults>
</compile_context>

<pallas_src>
import jax
import jax.numpy as jnp
from jax.experimental import pallas as pl
from jax.experimental.pallas import tpu as pltpu


_LANES = 512                    # slab width: multiple of 128 -> lane-dense, unmasked stores
_TILE_TARGET_BYTES = 4 << 20    # ~4 MiB per input tile; x2 (out) x2 (double buffer) = 16 MiB
_VMEM_LIMIT_BYTES = 32 << 20    # scoped-VMEM budget: safe on v5e/v6e (128 MiB) and v7x (64 MiB)


def _linreg_kernel(w_ref, b_ref, x_ref, o_ref):
    # w_ref / b_ref: (1,) f32 scalars in SMEM (read once -> single vreg broadcast).
    # x_ref / o_ref: (tile_rows, _LANES) VMEM tiles; one VPU mul+add per vreg.
    w = w_ref[0]
    b = b_ref[0]
    o_ref[...] = (x_ref[...] * w + b).astype(o_ref.dtype)


def _choose_tile_rows(rows, sublane, max_tile_rows):
    """Rows per grid step.

    Multiple of the dtype's sublane packing (or == full extent for tiny slabs),
    capped at ~_TILE_TARGET_BYTES per tile, and chosen so the grid has >= 2
    steps whenever the slab holds at least two sublane-aligned tiles (lets
    ("parallel",) shard the loop across both TensorCores on v7x).
    """
    if rows < 2 * sublane:
        return rows                              # single full-extent block (layout-legal)
    half = (rows + 1) // 2
    half = ((half + sublane - 1) // sublane) * sublane
    return min(max_tile_rows, half)


def _linreg_pallas(x_slab, w_scalar, b_scalar):
    """y = w*x + b over a lane-dense (rows, _LANES) slab, tiled along rows."""
    rows, lanes = x_slab.shape
    itemsize = x_slab.dtype.itemsize
    sublane = 8 * max(1, 4 // itemsize)          # f32 -> 8, bf16 -> 16, int8 -> 32
    max_tile_rows = max(
        sublane, (_TILE_TARGET_BYTES // (lanes * itemsize)) // sublane * sublane)
    tile_r = _choose_tile_rows(rows, sublane, max_tile_rows)
    grid = (pl.cdiv(rows, tile_r),)              # partial last block is masked by Pallas

    return pl.pallas_call(
        _linreg_kernel,
        out_shape=jax.ShapeDtypeStruct((rows, lanes), x_slab.dtype),
        grid=grid,
        in_specs=[
            pl.BlockSpec(memory_space=pltpu.SMEM),            # weight scalar
            pl.BlockSpec(memory_space=pltpu.SMEM),            # bias scalar
            pl.BlockSpec((tile_r, lanes), lambda i: (i, 0)),  # x tile
        ],
        out_specs=pl.BlockSpec((tile_r, lanes), lambda i: (i, 0)),
        compiler_params=pltpu.CompilerParams(
            dimension_semantics=("parallel",),
            vmem_limit_bytes=_VMEM_LIMIT_BYTES),
    )(w_scalar, b_scalar, x_slab)


def linear_regression_forward(x, weight, bias, *, min_kernel_elements=262_144):
    """y = x @ weight.T + bias, with weight (1, 1), bias (1,), x (N, 1)."""
    n, f = x.shape
    assert f == 1 and weight.shape == (1, 1) and bias.shape == (1,)

    w = weight.reshape(-1).astype(jnp.float32)   # (1,) SMEM scalars
    b = bias.reshape(-1).astype(jnp.float32)
    out_dtype = x.dtype

    n_main = (n // _LANES) * _LANES              # lane-aligned prefix length
    if n < min_kernel_elements or n_main == 0:
        # Small inputs: XLA's fused elementwise already runs at HBM roofline and
        # kernel launch + DMA setup would dominate.  Cast so both paths return
        # x.dtype.
        return (x * w[0] + b[0]).astype(out_dtype)

    x_flat = x.reshape(-1)
    if n_main == n:
        # Free offset-0 (n,) -> (rows, 512) reshape; no pad, no trim.
        y_flat = _linreg_pallas(x_flat.reshape(n // _LANES, _LANES), w, b).reshape(-1)
    else:
        # Ragged tail (< _LANES elements): kernel handles the aligned prefix,
        # plain JAX handles the tiny tail; stitched with one concatenate.
        y_main = _linreg_pallas(
            x_flat[:n_main].reshape(n_main // _LANES, _LANES), w, b).reshape(-1)
        y_tail = (x_flat[n_main:] * w[0] + b[0]).astype(out_dtype)
        y_flat = jnp.concatenate([y_main, y_tail])
    return y_flat.reshape(n, 1)


if __name__ == "__main__":
    key = jax.random.PRNGKey(0)
    kw, kb, k1, k2, k3 = jax.random.split(key, 5)

    # Mimic PyTorch Linear(1, 1) default init: U(-1/sqrt(in), 1/sqrt(in)) = U(-1, 1).
    weight = jax.random.uniform(kw, (1, 1), jnp.float32, -1.0, 1.0)
    bias = jax.random.uniform(kb, (1,), jnp.float32, -1.0, 1.0)

    def ref(x):
        return x @ weight.T + bias

    # (1) Tiny module-sized batch -> plain-JAX fast path (dtype-aligned).
    x_small = jax.random.normal(k1, (8, 1), jnp.float32)
    y_small = jax.block_until_ready(linear_regression_forward(x_small, weight, bias))
    assert y_small.shape == (8, 1) and y_small.dtype == x_small.dtype
    assert jnp.allclose(y_small, ref(x_small), atol=1e-6)

    # (2) Lane-aligned batch -> pure Pallas path with zero wrapper copies,
    #     >= 2 grid steps and a masked partial last block (rows=40, tile_r=24).
    x_mid = jax.random.normal(k2, (512 * 40, 1), jnp.float32)
    y_mid = jax.block_until_ready(
        linear_regression_forward(x_mid, weight, bias, min_kernel_elements=0))
    assert y_mid.shape == x_mid.shape and y_mid.dtype == x_mid.dtype
    assert jnp.allclose(y_mid, ref(x_mid), atol=1e-6)

    # (3) Ragged batch -> kernel on the aligned prefix + plain-JAX tail.
    x_rag = jax.random.normal(k3, (3000, 1), jnp.float32)
    y_rag = jax.block_until_ready(
        linear_regression_forward(x_rag, weight, bias, min_kernel_elements=0))
    assert y_rag.shape == x_rag.shape and y_rag.dtype == x_rag.dtype
    assert jnp.allclose(y_rag, ref(x_rag), atol=1e-6)

    print("KERNEL_OK")
</pallas_src>

<mosaic_0001>
module attributes {stable_mosaic.version = 11 : i64} {
  func.func @_linreg_kernel(%arg0: i32, %arg1: memref<1xf32, #tpu.memory_space<smem>>, %arg2: memref<1xf32, #tpu.memory_space<smem>>, %arg3: memref<24x512xf32, #tpu.memory_space<vmem>>, %arg4: memref<24x512xf32, #tpu.memory_space<vmem>>) attributes {dimension_semantics = [#tpu.dimension_semantics<parallel>], iteration_bounds = array<i64: 2>, scalar_prefetch = 0 : i64, scratch_operands = 0 : i64, tpu.core_type = #tpu.core_type<tc>, window_params = [{transform_indices = @transform_0, window_bounds = array<i64: 1>}, {transform_indices = @transform_1, window_bounds = array<i64: 1>}, {transform_indices = @transform_2, window_bounds = array<i64: 24, 512>}, {transform_indices = @transform_3, window_bounds = array<i64: 24, 512>}]} {
    %c0 = arith.constant 0 : index
    %0 = memref.load %arg1[%c0] : memref<1xf32, #tpu.memory_space<smem>>
    %c0_0 = arith.constant 0 : index
    %1 = memref.load %arg2[%c0_0] : memref<1xf32, #tpu.memory_space<smem>>
    %c0_1 = arith.constant 0 : index
    %c0_2 = arith.constant 0 : index
    %2 = vector.load %arg3[%c0_1, %c0_2] : memref<24x512xf32, #tpu.memory_space<vmem>>, vector<24x512xf32>
    %3 = vector.broadcast %0 : f32 to vector<24x512xf32>
    %4 = arith.mulf %2, %3 : vector<24x512xf32>
    %5 = vector.broadcast %1 : f32 to vector<24x512xf32>
    %6 = arith.addf %4, %5 : vector<24x512xf32>
    %c0_3 = arith.constant 0 : index
    %c0_4 = arith.constant 0 : index
    %7 = vector.load %arg4[%c0_3, %c0_4] : memref<24x512xf32, #tpu.memory_space<vmem>>, vector<24x512xf32>
    tpu.vector_store %arg4[%c0_3, %c0_4], %6 {strides = array<i32>} : memref<24x512xf32, #tpu.memory_space<vmem>>, vector<24x512xf32>,
    return
  }
  func.func @transform_0(%arg0: i32) -> i32 {
    %c0_i32 = arith.constant 0 : i32
    %c0_i32_0 = arith.constant 0 : i32
    return %c0_i32 : i32
  }
  func.func @transform_1(%arg0: i32) -> i32 {
    %c0_i32 = arith.constant 0 : i32
    %c0_i32_0 = arith.constant 0 : i32
    return %c0_i32 : i32
  }
  func.func @transform_2(%arg0: i32) -> (i32, i32) {
    %c0_i32 = arith.constant 0 : i32
    %c0_i32_0 = arith.constant 0 : i32
    return %arg0, %c0_i32 : i32, i32
  }
  func.func @transform_3(%arg0: i32) -> (i32, i32) {
    %c0_i32 = arith.constant 0 : i32
    %c0_i32_0 = arith.constant 0 : i32
    return %arg0, %c0_i32 : i32, i32
  }
}

</mosaic_0001>

<bundles_post_ra>
// kernel: tpu_custom_call.1
= control target key start
LH: loop header
LB: loop body
LE: loop exit
PB: predicated region body
PF: predicated region fallthrough
CT: control target
= control target key end

     0   :  { %s742_s0 = inlined_call_operand.<no memory space> [shape: f32[1], index: 0, kind: input, shape index: {}]   ;;  %s743_s1 = inlined_call_operand.<no memory space> [shape: f32[1], index: 1, kind: input, shape index: {}]   ;;  %s744_s2 = inlined_call_operand.hbm [shape: f32[40,512], index: 2, kind: input, shape index: {}]   ;;  %s745_s3 = inlined_call_operand.hbm [shape: f32[40,512], index: 3, kind: output, shape index: {}]  }
   0x1   :  { %8 = sst [smem:[#allocation2]] %s742_s0 }
   0x2   :  { %9 = sst [smem:[#allocation3]] %s743_s1 }
   0x3   :  { %10 = vsyncpa [#allocation5], 0 }
   0x4   :  { %12 = vsyncpa [#allocation5 + $0x1], 0 }
   0x5   :  { %13 = vsyncpa [#allocation6], 0 }
   0x6   :  { %15 = vsyncpa [#allocation6 + $0x1], 0  ;;  %s555_s16 = smov 0   ;;  %s557_s17 = smov 0  }
   0x7   :  { %s559_s18 = smov 0   ;;  %s561_s19 = smov 0  }
   0x8 LB: > { %s576_s0 = sadd.s32 4294967295, %s521_s19   ;;  %s358_s1 = sadd.s32 4294967294, %s521_s19   ;;  %s521_s19 = sphi %s561_s19, %s755_s19   ;;  %s517_s18 = sphi %s559_s18, %s754_s18   ;;  %s513_s17 = sphi %s557_s17, %s753_s17   ;;  %s509_s16 = sphi %s555_s16, %s752_s16  }
   0x9   : > { %s580_s20 = sadd.s32 1, %s521_s19   ;;  %s70_s21 = sadd.s32 1, %s517_s18 }
   0xa   : > { %s67_s22 = ssub.s32 %s521_s19, %s580_s20  ;;  %p77_p0 = scmp.ne.s32.totalorder %s517_s18, %s513_s17 }
   0xb   : > { %p68_p1 = scmp.eq.s32.totalorder %s67_s22, 0  ;;  %p78_p2 = scmp.eq.s32.totalorder %s521_s19, 0 }
   0xc   : > { %p83_p3 = scmp.ne.s32.totalorder %s513_s17, %s509_s16  ;;  %p84_p4 = scmp.eq.s32.totalorder %s576_s0, 0 }
   0xd   : > { %s592_s23 = scalar_select %p68_p1, %s517_s18, %s70_s21  }
   0xe   : > { %p79_p5 = por %p78_p2, %p77_p0  ;;  %p594_p6 = por %p84_p4, %p83_p3 }
   0xf   : > { %p107_p7 = scmp.eq.s32.totalorder %s576_s0, 1  ;;  %p113_p8 = scmp.eq.s32.totalorder %s358_s1, 1 }
  0x10   : > { %p746_p11 = scmp.ge.s32.totalorder %s521_s19, 2 }
  0x11   : > { %p599_p9 = por %p107_p7, %p77_p0  ;;  %p603_p10 = por %p113_p8, %p83_p3 }
  0x12   : > { %135 = sbr.rel (%p746_p11) target bundleno = 57 (0x39), region = 24 }
  0x13   : > { %s749_s26 = scalar_select %p603_p10, 1, 0 }
  0x17   : > { %138 = sbr.rel (!%p79_p5) target bundleno = 57 (0x39), region = 28  ;;  %s139_s27 = sand.u32 (%p79_p5), 1, %s517_s18  }
  0x18   : > { %s144_s28 = smul.u32 (%p79_p5), 3, %s521_s19  ;;  %s615_s6 = scalar_lea.sflag (%p79_p5), [#allocation5], %s139_s27 }
  0x19   : > { %s386_s29 = smul.u32 (%p79_p5), 96, %s139_s27 }
  0x1a   : > { %s145_s30 = ssub.s32 (%p79_p5), 5, %s144_s28 }
  0x1b   : > { %p146_p12 = scmp.lt.s32.totalorder (%p79_p5), %s145_s30, 3  ;;  %s143_s7 = scalar_lea.vmem (%p79_p5), [#allocation4], %s386_s29 }
  0x1d   : > { %s757_s30 = smov (!%p146_p12, %s145_s30), 3 }
  0x1e   : > { %s612_s4 = sshll.u32 %s757_s30, 9 }
  0x1f   : > { %s151_s5 = ssub.s32 1536, %s612_s4 }
  0x20   : > { %152 = vsyncadd %s615_s6, %s151_s5  ;;  %p363_p13 = scmp.ne.s32.totalorder %s612_s4, 0  ;;  %s384_s8 = smul.u32 1536, %s521_s19 }
  0x21   : > { %s158_s9 = sshll.u32 %s143_s7, 4  ;;  %s435_s1 = scalar_lea.hbm %s744_s2, 2560  ;;  %s625_s9 = int_to_ptr.vmem [resolvable:$true] %s158_s9 }
  0x22   : > { %s623_s12 = scalar_lea.hbm %s744_s2, %s384_s8 }
  0x23   : > { %s431_s13 = scalar_lea.hbm %s623_s12, %s612_s4  ;;  %p436_p3 = scmp.lt.s32.totalorder %s623_s12, %s744_s2 }
  0x24   : > { %p432_p0 = scmp.ne.s32.totalorder %s623_s12, %s431_s13  ;;  %p437_p4 = scmp.lt.s32.totalorder %s435_s1, %s431_s13 }
  0x26   : > { %p433_p1 = pnand %p432_p0, %p363_p13  ;;  %p438_p5 = por %p437_p4, %p436_p3 }
  0x28   : > { %p434_p2 = pneg %p433_p1 }
  0x2a   : > { %p439_p7 = pnand %p438_p5, %p434_p2 }
  0x2c   : > { %442 = shalt.err (!%p439_p7)
}
  0x2d   : > { %s443_s27 = scalar_lea.vmem %s625_s9, %s612_s4  ;;  %s523_s28 = smov [#allocation4]  }
  0x2e   : > { %p444_p8 = scmp.ne.s32.totalorder %s625_s9, %s443_s27  ;;  %s447_s29 = sshll.u32 %s523_s28, 4  ;;  %s448_s29 = int_to_ptr.vmem [resolvable:$false] %s447_s29 }
  0x2f   : > { %s449_s30 = scalar_lea.vmem %s448_s29, 3072  ;;  %p450_p1 = scmp.lt.s32.totalorder %s625_s9, %s448_s29 }
  0x30   : > { %p445_p12 = pnand %p444_p8, %p363_p13  ;;  %p451_p11 = scmp.lt.s32.totalorder %s449_s30, %s443_s27 }
  0x32   : > { %p446_p0 = pneg %p445_p12  ;;  %p452_p10 = por %p451_p11, %p450_p1 }
  0x34   : > { %p453_p3 = pnand %p452_p10, %p446_p0 }
  0x36   : > { %456 = shalt.err (!%p453_p3)
}
  0x37   : > { %s524_s5 = smov 512   ;;  %s525_s7 = smov 32  }
  0x38   : > { %164 = dma.hbm_to_vmem [thread:$0]  (%p363_p13), %s623_s12, %s612_s4, %s625_s9, %s615_s6, %s524_s5, %s524_s5, %s525_s7  }
  0x39 PF: > { %p368_p2 = scmp.ge.s32.totalorder %s521_s19, 1  ;;  %p166_p4 = scmp.lt.s32.totalorder %s521_s19, 3 }
  0x3b   : > { %p167_p5 = pnand %p368_p2, %p166_p4 }
  0x3c   : > { %s654_s8 = sand.u32 (!%p167_p5), 1, %s513_s17  }
  0x3d   : > { %170 = sbr.rel (%p167_p5) target bundleno = 111 (0x6f), region = 32  ;;  %s173_s11 = scalar_lea.sflag (!%p167_p5), [#allocation5], %s654_s8 }
  0x3e   : > { %s387_s10 = smul.u32 (!%p167_p5), 96, %s654_s8 }
  0x40   : > { %s176_s13 = scalar_lea.vmem (!%p167_p5), [#allocation4], %s387_s10 }
  0x42   : > { %500 = dma.done.wait (%p594_p6), %s173_s11, 1536  }
  0x43   : > { %502 = vsyncadd (%p594_p6), %s173_s11, 4294965760  ;;  %s211_s4 = sld [smem:[#allocation2]]  ;;  %v213_v0 = vld [vmem:[%s176_s13] sm:$0xff]  ;;  %v214_v2 = vld [vmem:[%s176_s13 + $0x8] sm:$0xff]  ;;  %s666_s24 = scalar_lea.vmem [#allocation7], %s387_s10 }
  0x44   : > { %s212_s6 = sld [smem:[#allocation3]]  ;;  %v215_v3 = vld [vmem:[%s176_s13 + $0x10] sm:$0xff]  ;;  %v216_v8 = vld [vmem:[%s176_s13 + $0x18] sm:$0xff]  ;;  %v217_v9 = vld [vmem:[%s176_s13 + $0x20] sm:$0xff]  ;;  %s264_s9 = scalar_lea.sflag [#allocation6], %s654_s8 }
  0x45   : > { %v218_v10 = vld [vmem:[%s176_s13 + $0x28] sm:$0xff]  ;;  %v219_v14 = vld [vmem:[%s176_s13 + $0x30] sm:$0xff]  ;;  %v220_v15 = vld [vmem:[%s176_s13 + $0x38] sm:$0xff]  ;;  %s271_s12 = smul.u32 (%p599_p9), 3, %s576_s0 }
  0x46   : > { %v221_v16 = vld [vmem:[%s176_s13 + $0x40] sm:$0xff]  ;;  %v222_v21 = vld [vmem:[%s176_s13 + $0x48] sm:$0xff]  ;;  %v223_v22 = vld [vmem:[%s176_s13 + $0x50] sm:$0xff] }
  0x47   : > { %v224_v23 = vld [vmem:[%s176_s13 + $0x58] sm:$0xff]  ;;  %s272_s14 = ssub.s32 (%p599_p9), 5, %s271_s12 }
  0x48   : > { %p273_p6 = scmp.lt.s32.totalorder (%p599_p9), %s272_s14, 3 }
  0x49   : > { %v225_v1 = vstv %s211_s4 }
  0x4a   : > { %v226_v4 = vmul.f32 %v225_v1, %v213_v0  ;;  %v238_v5 = vstv %s212_s6  ;;  %v227_v6 = vmul.f32 %v225_v1, %v214_v2  ;;  %v228_v7 = vmul.f32 %v225_v1, %v215_v3 }
  0x4b   : > { %v229_v11 = vmul.f32 %v225_v1, %v216_v8  ;;  %v230_v12 = vmul.f32 %v225_v1, %v217_v9  ;;  %v231_v13 = vmul.f32 %v225_v1, %v218_v10  ;;  %v232_v20 = vmul.f32 %v225_v1, %v219_v14 }
  0x4c   : > { %v239_v17 = vadd.f32 %v238_v5, %v226_v4  ;;  %v240_v18 = vadd.f32 %v238_v5, %v227_v6  ;;  %v241_v19 = vadd.f32 %v238_v5, %v228_v7  ;;  %v233_v27 = vmul.f32 %v225_v1, %v220_v15 }
  0x4d   : > { %v242_v24 = vadd.f32 %v238_v5, %v229_v11  ;;  %v243_v25 = vadd.f32 %v238_v5, %v230_v12  ;;  %v244_v26 = vadd.f32 %v238_v5, %v231_v13  ;;  %v245_v28 = vadd.f32 %v238_v5, %v232_v20 }
  0x4e   : > { %251 = vst [vmem:[%s666_s24] sm:$0xff] %v239_v17  ;;  %252 = vst [vmem:[%s666_s24 + $0x8] sm:$0xff] %v240_v18  ;;  %v234_v29 = vmul.f32 %v225_v1, %v221_v16  ;;  %v235_v30 = vmul.f32 %v225_v1, %v222_v21  ;;  %v236_v31 = vmul.f32 %v225_v1, %v223_v22 }
  0x4f   : > { %253 = vst [vmem:[%s666_s24 + $0x10] sm:$0xff] %v241_v19  ;;  %254 = vst [vmem:[%s666_s24 + $0x18] sm:$0xff] %v242_v24  ;;  %v246_v32 = vadd.f32 %v238_v5, %v233_v27  ;;  %v237_v33 = vmul.f32 %v225_v1, %v224_v23  ;;  %270 = sbr.rel (!%p599_p9) target bundleno = 111 (0x6f), region = 40 }
  0x50   : > { %255 = vst [vmem:[%s666_s24 + $0x20] sm:$0xff] %v243_v25  ;;  %256 = vst [vmem:[%s666_s24 + $0x28] sm:$0xff] %v244_v26  ;;  %v247_v34 = vadd.f32 %v238_v5, %v234_v29  ;;  %v248_v35 = vadd.f32 %v238_v5, %v235_v30  ;;  %v249_v36 = vadd.f32 %v238_v5, %v236_v31 }
  0x51   : > { %257 = vst [vmem:[%s666_s24 + $0x30] sm:$0xff] %v245_v28  ;;  %258 = vst [vmem:[%s666_s24 + $0x38] sm:$0xff] %v246_v32  ;;  %v250_v37 = vadd.f32 %v238_v5, %v237_v33 }
  0x52   : > { %259 = vst [vmem:[%s666_s24 + $0x40] sm:$0xff] %v247_v34  ;;  %260 = vst [vmem:[%s666_s24 + $0x48] sm:$0xff] %v248_v35 }
  0x53   : > { %261 = vst [vmem:[%s666_s24 + $0x50] sm:$0xff] %v249_v36  ;;  %262 = vst [vmem:[%s666_s24 + $0x58] sm:$0xff] %v250_v37 }
  0x54   : > { %s759_s14 = smov (!%p273_p6, %s272_s14), 3 }
  0x55   : > { %s684_s15 = sshll.u32 %s759_s14, 9 }
  0x56   : > { %s278_s1 = ssub.s32 1536, %s684_s15 }
  0x57   : > { %279 = vsyncadd %s264_s9, %s278_s1  ;;  %p371_p10 = scmp.ne.s32.totalorder %s684_s15, 0  ;;  %s385_s25 = smul.u32 1536, %s576_s0 }
  0x58   : > { %s285_s21 = sshll.u32 %s666_s24, 4  ;;  %s526_s30 = smov [#allocation7]   ;;  %s697_s21 = int_to_ptr.vmem [resolvable:$true] %s285_s21 }
  0x59   : > { %s695_s28 = scalar_lea.hbm %s745_s3, %s385_s25  ;;  %s457_s29 = scalar_lea.vmem %s697_s21, %s684_s15 }
  0x5a   : > { %p458_p9 = scmp.ne.s32.totalorder %s697_s21, %s457_s29  ;;  %s461_s5 = sshll.u32 %s526_s30, 4  ;;  %s462_s5 = int_to_ptr.vmem [resolvable:$false] %s461_s5 }
  0x5b   : > { %s463_s0 = scalar_lea.vmem %s462_s5, 3072  ;;  %p464_p7 = scmp.lt.s32.totalorder %s697_s21, %s462_s5 }
  0x5c   : > { %p459_p11 = pnand %p458_p9, %p371_p10  ;;  %p465_p8 = scmp.lt.s32.totalorder %s463_s0, %s457_s29 }
  0x5e   : > { %p460_p13 = pneg %p459_p11  ;;  %p466_p12 = por %p465_p8, %p464_p7 }
  0x60   : > { %p467_p0 = pnand %p466_p12, %p460_p13 }
  0x62   : > { %470 = shalt.err (!%p467_p0)
}
  0x63   : > { %s471_s7 = scalar_lea.hbm %s695_s28, %s684_s15  ;;  %s475_s13 = scalar_lea.hbm %s745_s3, 2560 }
  0x64   : > { %p472_p1 = scmp.ne.s32.totalorder %s695_s28, %s471_s7  ;;  %p476_p4 = scmp.lt.s32.totalorder %s695_s28, %s745_s3 }
  0x65   : > { %p477_p5 = scmp.lt.s32.totalorder %s475_s13, %s471_s7 }
  0x66   : > { %p473_p3 = pnand %p472_p1, %p371_p10 }
  0x67   : > { %p478_p6 = por %p477_p5, %p476_p4 }
  0x68   : > { %p474_p2 = pneg %p473_p3 }
  0x6a   : > { %p479_p9 = pnand %p478_p6, %p474_p2 }
  0x6c   : > { %482 = shalt.err (!%p479_p9)
}
  0x6d   : > { %s527_s24 = smov 512   ;;  %s528_s12 = smov 32  }
  0x6e   : > { %291 = dma.vmem_to_hbm [thread:$0]  (%p371_p10), %s697_s21, %s684_s15, %s695_s28, %s264_s9, %s527_s24, %s527_s24, %s528_s12  }
  0x6f PF: > { %s300_s14 = sand.u32 1, %s509_s16   ;;  %p750_p11 = scmp.ne.s32.totalorder %s749_s26, 0 }
  0x70   : > { %p751_p13 = scmp.ge.s32.totalorder %s521_s19, 2  ;;  %s301_s1 = scalar_lea.sflag [#allocation6], %s300_s14 }
  0x72   : > { %p391_p7 = pnand %p751_p13, %p750_p11 }
  0x74   : > { %p392_p8 = pneg %p391_p7 }
  0x76   : > { %504 = dma.done.wait (%p392_p8), %s301_s1, 1536  }
  0x77   : > { %506 = vsyncadd (%p392_p8), %s301_s1, 4294965760  ;;  %p18_p12 = scmp.ge.s32.totalorder %s580_s20, 4   ;;  %s752_s16 = smov %s513_s17 }
  0x78   : > { %s753_s17 = smov %s517_s18  ;;  %s754_s18 = smov %s592_s23 }
  0x79   : > { %s755_s19 = smov %s580_s20  ;;  %20 = sbr.rel (!%p18_p12) target bundleno = 8 (0x8), region = 77 }
  0x7e   :  { %306 = vsyncpa [#allocation5], 1 }
  0x7f   :  { %308 = vsyncpa [#allocation5 + $0x1], 1 }
  0x80   :  { %309 = vsyncpa [#allocation6], 1 }
  0x81   :  { %311 = vsyncpa [#allocation6 + $0x1], 1 }

</bundles_post_ra>
